<compile_context>
chip_gen: v5e
topology: v5e:2x2
jax: 0.10.0
libtpu: 0.0.40
codegen_flags: <defaults>
</compile_context>

<pallas_src>
import jax
import jax.numpy as jnp
from jax.experimental import pallas as pl
from jax.experimental.pallas import tpu as pltpu

HIDDEN = 128


def critic_kernel(x_ref, w1_ref, b1_ref, w2_ref, b2_ref, w3_ref, b3_ref,
                  out_ref):
    # Cast the f32 x tile to bf16 in-kernel (VPU is idle); MXU gets bf16
    # operands with f32 accumulation.
    x_bf = x_ref[...].astype(jnp.bfloat16)

    # fc1 + ReLU
    h1 = jnp.dot(x_bf, w1_ref[...], preferred_element_type=jnp.float32)
    h1 = jnp.maximum(h1 + b1_ref[...], 0.0)

    # fc2 + ReLU (re-cast activations to bf16 for the MXU)
    h2 = jnp.dot(h1.astype(jnp.bfloat16), w2_ref[...],
                 preferred_element_type=jnp.float32)
    h2 = jnp.maximum(h2 + b2_ref[...], 0.0)

    # fc3 (value head): N=1 matmul would waste the MXU -> VPU mul + XLU lane
    # reduce against the lane-dense [1, HIDDEN] w3 row.  b3 is an SMEM scalar.
    v = jnp.sum(h2 * w3_ref[...], axis=-1, keepdims=True) + b3_ref[0, 0]

    # (tb, 1) store is a masked vst; output is only 4*B bytes so lane-dense
    # packing is not worth it unless a profile says otherwise.
    out_ref[...] = v.astype(out_ref.dtype)


def critic_forward(x, prepared_params, *, block_b=512):
    """x: [B, state_size] float32 -> value: [B, 1] float32.

    prepared_params: output of prepare_params() (bf16 weights, f32 biases,
    lane-dense w3 row).  block_b: batch tile; 512 amortizes per-grid-step
    overhead on all generations and stays inside v5e's 16 MiB scoped VMEM.
    Sweep 512-2048 on v6e/v7x if this is hot.
    """
    w1_bf, b1, w2_bf, b2, w3_row, b3 = prepared_params
    B, S = x.shape

    # Batch tile: multiple of 16 sublanes (bf16-friendly), capped at block_b.
    tb = min(block_b, B)
    tb = max(16, ((tb + 15) // 16) * 16)
    nb = pl.cdiv(B, tb)
    bp = nb * tb
    if bp != B:
        # Pad only when B is not a tile multiple (padded rows produce
        # relu(b1)-derived garbage and are sliced off below).
        x = jnp.pad(x, ((0, bp - B), (0, 0)))

    # Full-extent, VMEM-resident blocks for weights/biases (constant over grid).
    resident = lambda a: pl.BlockSpec(a.shape, lambda i: (0,) * a.ndim)

    out = pl.pallas_call(
        critic_kernel,
        out_shape=jax.ShapeDtypeStruct((bp, 1), jnp.float32),
        grid_spec=pltpu.PrefetchScalarGridSpec(
            num_scalar_prefetch=0,
            grid=(nb,),
            in_specs=[
                pl.BlockSpec((tb, S), lambda i: (i, 0)),  # x: pipelined f32 tiles
                resident(w1_bf), resident(b1),
                resident(w2_bf), resident(b2),
                resident(w3_row),
                pl.BlockSpec(memory_space=pltpu.MemorySpace.SMEM),  # b3 scalar
            ],
            out_specs=pl.BlockSpec((tb, 1), lambda i: (i, 0)),
        ),
        compiler_params=pltpu.CompilerParams(
            # Batch tiles are independent.  On v7x, if a profile shows one TC
            # idle, switch this axis to pltpu.CORE_PARALLEL.
            dimension_semantics=("parallel",),
        ),
    )(x, w1_bf, b1, w2_bf, b2, w3_row, b3)

    return out[:B]


def init_params(key, state_size, hidden=HIDDEN):
    """f32 params mirroring nn.Linear's U(-1/sqrt(fan_in), 1/sqrt(fan_in)).

    Stored as [in_features, out_features] so out = x @ W + b.
    """
    ks = jax.random.split(key, 6)

    def linear(kw, kb, fan_in, fan_out):
        bound = 1.0 / jnp.sqrt(fan_in)
        w = jax.random.uniform(kw, (fan_in, fan_out), jnp.float32, -bound, bound)
        b = jax.random.uniform(kb, (1, fan_out), jnp.float32, -bound, bound)
        return w, b

    w1, b1 = linear(ks[0], ks[1], state_size, hidden)
    w2, b2 = linear(ks[2], ks[3], hidden, hidden)
    w3, b3 = linear(ks[4], ks[5], hidden, 1)
    return (w1, b1, w2, b2, w3, b3)


def prepare_params(params):
    """One-time, outside the per-call path: bf16 MXU weights, lane-dense w3."""
    w1, b1, w2, b2, w3, b3 = params
    return (w1.astype(jnp.bfloat16), b1,
            w2.astype(jnp.bfloat16), b2,
            w3.T,          # [1, hidden] f32 row: fc3 runs on the VPU/XLU
            b3)            # (1, 1) f32 scalar -> SMEM


if __name__ == "__main__":
    key = jax.random.PRNGKey(0)
    k_x, k_p = jax.random.split(key)

    B, STATE_SIZE = 8, 32
    x = jax.random.normal(k_x, (B, STATE_SIZE), jnp.float32)
    params = init_params(k_p, STATE_SIZE)
    prepared = prepare_params(params)

    value = critic_forward(x, prepared)
    jax.block_until_ready(value)
    assert value.shape == (B, 1)

    w1, b1, w2, b2, w3, b3 = params

    # Reference with the same bf16-operand / f32-accumulate math (tight tol).
    h1 = jnp.maximum(
        jnp.dot(x.astype(jnp.bfloat16), w1.astype(jnp.bfloat16),
                preferred_element_type=jnp.float32) + b1, 0.0)
    h2 = jnp.maximum(
        jnp.dot(h1.astype(jnp.bfloat16), w2.astype(jnp.bfloat16),
                preferred_element_type=jnp.float32) + b2, 0.0)
    ref_bf16 = jnp.sum(h2 * w3.T, axis=-1, keepdims=True) + b3
    assert jnp.allclose(value, ref_bf16, atol=1e-3, rtol=1e-3), (
        float(jnp.max(jnp.abs(value - ref_bf16))))

    # Reference of the original full-f32 PyTorch math (loose tol for bf16 ops).
    ref_f32 = jnp.maximum(x @ w1 + b1, 0.0)
    ref_f32 = jnp.maximum(ref_f32 @ w2 + b2, 0.0)
    ref_f32 = ref_f32 @ w3 + b3
    assert jnp.allclose(value, ref_f32, atol=5e-2, rtol=5e-2), (
        float(jnp.max(jnp.abs(value - ref_f32))))

    print("KERNEL_OK")
</pallas_src>

<mosaic_0001>
module attributes {stable_mosaic.version = 11 : i64} {
  func.func @critic_kernel(%arg0: i32, %arg1: memref<16x32xf32, #tpu.memory_space<vmem>>, %arg2: memref<32x128xbf16, #tpu.memory_space<vmem>>, %arg3: memref<1x128xf32, #tpu.memory_space<vmem>>, %arg4: memref<128x128xbf16, #tpu.memory_space<vmem>>, %arg5: memref<1x128xf32, #tpu.memory_space<vmem>>, %arg6: memref<1x128xf32, #tpu.memory_space<vmem>>, %arg7: memref<1x1xf32, #tpu.memory_space<smem>>, %arg8: memref<16x1xf32, #tpu.memory_space<vmem>>) attributes {dimension_semantics = [#tpu.dimension_semantics<parallel>], iteration_bounds = array<i64: 1>, scalar_prefetch = 0 : i64, scratch_operands = 0 : i64, tpu.core_type = #tpu.core_type<tc>, window_params = [{transform_indices = @transform_0, window_bounds = array<i64: 16, 32>}, {pipeline_mode = #tpu.pipeline_mode<synchronous>, transform_indices = @transform_1, window_bounds = array<i64: 32, 128>}, {pipeline_mode = #tpu.pipeline_mode<synchronous>, transform_indices = @transform_2, window_bounds = array<i64: 1, 128>}, {pipeline_mode = #tpu.pipeline_mode<synchronous>, transform_indices = @transform_3, window_bounds = array<i64: 128, 128>}, {pipeline_mode = #tpu.pipeline_mode<synchronous>, transform_indices = @transform_4, window_bounds = array<i64: 1, 128>}, {pipeline_mode = #tpu.pipeline_mode<synchronous>, transform_indices = @transform_5, window_bounds = array<i64: 1, 128>}, {transform_indices = @transform_6, window_bounds = array<i64: 1, 1>}, {transform_indices = @transform_7, window_bounds = array<i64: 16, 1>}]} {
    %c0 = arith.constant 0 : index
    %c0_0 = arith.constant 0 : index
    %0 = vector.load %arg1[%c0, %c0_0] : memref<16x32xf32, #tpu.memory_space<vmem>>, vector<16x32xf32>
    %1 = arith.truncf %0 : vector<16x32xf32> to vector<16x32xbf16>
    %c0_1 = arith.constant 0 : index
    %c0_2 = arith.constant 0 : index
    %2 = vector.load %arg2[%c0_1, %c0_2] : memref<32x128xbf16, #tpu.memory_space<vmem>>, vector<32x128xbf16>
    %cst = arith.constant dense<0.000000e+00> : vector<16x128xf32>
    %3 = tpu.matmul %1, %2, %cst {dimension_numbers = #tpu.dot_dimension_numbers<[1], [0], [0], [1], [0, 0, 1, 1], [], []>} : vector<16x32xbf16>, vector<32x128xbf16>, vector<16x128xf32> -> vector<16x128xf32>
    %c0_3 = arith.constant 0 : index
    %c0_4 = arith.constant 0 : index
    %4 = vector.load %arg3[%c0_3, %c0_4] : memref<1x128xf32, #tpu.memory_space<vmem>>, vector<1x128xf32>
    %5 = vector.broadcast %4 : vector<1x128xf32> to vector<16x128xf32>
    %6 = arith.addf %3, %5 : vector<16x128xf32>
    %cst_5 = arith.constant 0.000000e+00 : f32
    %7 = vector.broadcast %cst_5 : f32 to vector<16x128xf32>
    %8 = arith.maximumf %6, %7 : vector<16x128xf32>
    %9 = arith.truncf %8 : vector<16x128xf32> to vector<16x128xbf16>
    %c0_6 = arith.constant 0 : index
    %c0_7 = arith.constant 0 : index
    %10 = vector.load %arg4[%c0_6, %c0_7] : memref<128x128xbf16, #tpu.memory_space<vmem>>, vector<128x128xbf16>
    %cst_8 = arith.constant dense<0.000000e+00> : vector<16x128xf32>
    %11 = tpu.matmul %9, %10, %cst_8 {dimension_numbers = #tpu.dot_dimension_numbers<[1], [0], [0], [1], [0, 0, 1, 1], [], []>} : vector<16x128xbf16>, vector<128x128xbf16>, vector<16x128xf32> -> vector<16x128xf32>
    %c0_9 = arith.constant 0 : index
    %c0_10 = arith.constant 0 : index
    %12 = vector.load %arg5[%c0_9, %c0_10] : memref<1x128xf32, #tpu.memory_space<vmem>>, vector<1x128xf32>
    %13 = vector.broadcast %12 : vector<1x128xf32> to vector<16x128xf32>
    %14 = arith.addf %11, %13 : vector<16x128xf32>
    %cst_11 = arith.constant 0.000000e+00 : f32
    %15 = vector.broadcast %cst_11 : f32 to vector<16x128xf32>
    %16 = arith.maximumf %14, %15 : vector<16x128xf32>
    %c0_12 = arith.constant 0 : index
    %c0_13 = arith.constant 0 : index
    %17 = vector.load %arg6[%c0_12, %c0_13] : memref<1x128xf32, #tpu.memory_space<vmem>>, vector<1x128xf32>
    %18 = vector.broadcast %17 : vector<1x128xf32> to vector<16x128xf32>
    %19 = arith.mulf %16, %18 : vector<16x128xf32>
    %cst_14 = arith.constant dense<0.000000e+00> : vector<16xf32>
    %20 = vector.multi_reduction <add>, %19, %cst_14 [1] : vector<16x128xf32> to vector<16xf32>
    %21 = vector.shape_cast %20 : vector<16xf32> to vector<16x1xf32>
    %c0_15 = arith.constant 0 : index
    %c0_16 = arith.constant 0 : index
    %22 = memref.load %arg7[%c0_15, %c0_16] : memref<1x1xf32, #tpu.memory_space<smem>>
    %23 = vector.broadcast %22 : f32 to vector<16x1xf32>
    %24 = arith.addf %21, %23 : vector<16x1xf32>
    %c0_17 = arith.constant 0 : index
    %c0_18 = arith.constant 0 : index
    %25 = vector.load %arg8[%c0_17, %c0_18] : memref<16x1xf32, #tpu.memory_space<vmem>>, vector<16x1xf32>
    tpu.vector_store %arg8[%c0_17, %c0_18], %24 {strides = array<i32>} : memref<16x1xf32, #tpu.memory_space<vmem>>, vector<16x1xf32>,
    return
  }
  func.func @transform_0(%arg0: i32) -> (i32, i32) {
    %c0_i32 = arith.constant 0 : i32
    %c0_i32_0 = arith.constant 0 : i32
    return %arg0, %c0_i32 : i32, i32
  }
  func.func @transform_1(%arg0: i32) -> (i32, i32) {
    %c0_i32 = arith.constant 0 : i32
    %c0_i32_0 = arith.constant 0 : i32
    %c0_i32_1 = arith.constant 0 : i32
    return %c0_i32, %c0_i32_0 : i32, i32
  }
  func.func @transform_2(%arg0: i32) -> (i32, i32) {
    %c0_i32 = arith.constant 0 : i32
    %c0_i32_0 = arith.constant 0 : i32
    %c0_i32_1 = arith.constant 0 : i32
    return %c0_i32, %c0_i32_0 : i32, i32
  }
  func.func @transform_3(%arg0: i32) -> (i32, i32) {
    %c0_i32 = arith.constant 0 : i32
    %c0_i32_0 = arith.constant 0 : i32
    %c0_i32_1 = arith.constant 0 : i32
    return %c0_i32, %c0_i32_0 : i32, i32
  }
  func.func @transform_4(%arg0: i32) -> (i32, i32) {
    %c0_i32 = arith.constant 0 : i32
    %c0_i32_0 = arith.constant 0 : i32
    %c0_i32_1 = arith.constant 0 : i32
    return %c0_i32, %c0_i32_0 : i32, i32
  }
  func.func @transform_5(%arg0: i32) -> (i32, i32) {
    %c0_i32 = arith.constant 0 : i32
    %c0_i32_0 = arith.constant 0 : i32
    %c0_i32_1 = arith.constant 0 : i32
    return %c0_i32, %c0_i32_0 : i32, i32
  }
  func.func @transform_6(%arg0: i32) -> (i32, i32) {
    %c0_i32 = arith.constant 0 : i32
    %c0_i32_0 = arith.constant 0 : i32
    %c0_i32_1 = arith.constant 0 : i32
    return %c0_i32, %c0_i32_0 : i32, i32
  }
  func.func @transform_7(%arg0: i32) -> (i32, i32) {
    %c0_i32 = arith.constant 0 : i32
    %c0_i32_0 = arith.constant 0 : i32
    return %arg0, %c0_i32 : i32, i32
  }
}

</mosaic_0001>

<bundles_post_ra>
// kernel: tpu_custom_call.1
= control target key start
LH: loop header
LB: loop body
LE: loop exit
PB: predicated region body
PF: predicated region fallthrough
CT: control target
= control target key end

     0   :  { %13 = vsyncpa [#allocation4], 0  ;;  %s437_s0 = inlined_call_operand.hbm [shape: f32[16,32], index: 0, kind: input, shape index: {}]   ;;  %s438_s1 = inlined_call_operand.hbm [shape: bf16[32,128], index: 1, kind: input, shape index: {}]   ;;  %s439_s2 = inlined_call_operand.vmem [shape: f32[1,128], index: 2, kind: input, shape index: {}]   ;;  %s440_s3 = inlined_call_operand.hbm [shape: bf16[128,128], index: 3, kind: input, shape index: {}]   ;;  %s441_s4 = inlined_call_operand.vmem [shape: f32[1,128], index: 4, kind: input, shape index: {}]   ;;  %s442_s5 = inlined_call_operand.vmem [shape: f32[1,128], index: 5, kind: input, shape index: {}]   ;;  %s443_s6 = inlined_call_operand.<no memory space> [shape: f32[1,1], index: 6, kind: input, shape index: {}]   ;;  %s444_s7 = inlined_call_operand.vmem [shape: f32[16,1], index: 7, kind: output, shape index: {}]  }
   0x1   :  { %14 = vsyncpa [#allocation6], 0  ;;  %s32_s26 = sshll.u32 %s438_s1, 4  ;;  %s363_s27 = smov [#allocation5]   ;;  %s33_s26 = int_to_ptr.hbm [resolvable:$true] %s32_s26 }
   0x2   :  { %s34_s28 = sshll.u32 %s363_s27, 4  ;;  %s19_s8 = sshll.u32 %s437_s0, 4  ;;  %s35_s28 = int_to_ptr.vmem [resolvable:$true] %s34_s28  ;;  %s20_s8 = int_to_ptr.hbm [resolvable:$true] %s19_s8 }
   0x3   :  { %s364_s9 = smov 64   ;;  %s365_s10 = smov 4  }
   0x4   :  { %40 = dma.hbm_to_vmem [thread:$0]  %s33_s26, 256, %s35_s28, [#allocation6], %s364_s9, %s364_s9, %s365_s10  }
   0x5   :  { %s366_s11 = smov [#allocation3]   ;;  %s367_s13 = smov 128  }
   0x6   :  { %s21_s12 = sshll.u32 %s366_s11, 4  ;;  %s368_s14 = smov 8   ;;  %s22_s12 = int_to_ptr.vmem [resolvable:$true] %s21_s12 }
   0x7   :  { %27 = dma.hbm_to_vmem [thread:$0]  %s20_s8, 256, %s22_s12, [#allocation4], %s367_s13, %s367_s13, %s368_s14  }
   0x8   :  { %s47_s16 = sshll.u32 %s440_s3, 4  ;;  %s369_s17 = smov [#allocation7]   ;;  %s48_s16 = int_to_ptr.hbm [resolvable:$true] %s47_s16 }
   0x9   :  { %s49_s18 = sshll.u32 %s369_s17, 4  ;;  %s50_s18 = int_to_ptr.vmem [resolvable:$true] %s49_s18 }
   0xa   :  { %55 = dma.hbm_to_vmem [thread:$0]  %s48_s16, 1024, %s50_s18, [#allocation6], %s364_s9, %s364_s9, %s365_s10  }
   0xb   :  { %359 = dma.done.wait [#allocation4], 256  }
   0xc   :  { %360 = vsyncadd [#allocation4], 4294967040 }
   0xd   :  { %361 = dma.done.wait [#allocation6], 1280  }
   0xe   :  { %362 = vsyncadd [#allocation6], 4294966016  ;;  %v268_v0 = vld [vmem:[#allocation5 + $0x8] sm:$0xff]  ;;  %v267_v1 = vld [vmem:[#allocation5] sm:$0xff]  ;;  %vm98_vm0 = vcmask 261120   ;;  %v214_v31 = vstv %s443_s6  ;;  %vm217_vm1 = vcmask 7168  }
   0xf   :  { %v276_v2 = vld [vmem:[#allocation7 + $0x38] sm:$0xff]  ;;  %108 = vmatpush.bf16.msra.mxu0 %v268_v0  ;;  %v75_v3 = vld [vmem:[#allocation3] sm:$0xff]  ;;  %v76_v4 = vld [vmem:[#allocation3 + $0x8] sm:$0xff] }
  0x10   :  { %187 = vmatpush.bf16.msra.mxu1 %v276_v2  ;;  %v275_v5 = vld [vmem:[#allocation7 + $0x30] sm:$0xff]  ;;  %v77_v6 = vpack.c.bf16 %v76_v4, %v75_v3  ;;  %v274_v7 = vld [vmem:[#allocation7 + $0x28] sm:$0xff]  ;;  %v273_v8 = vld [vmem:[#allocation7 + $0x20] sm:$0xff] }
  0x11   :  { %v272_v9 = vld [vmem:[#allocation7 + $0x18] sm:$0xff]  ;;  %v271_v10 = vld [vmem:[#allocation7 + $0x10] sm:$0xff]  ;;  %v270_v11 = vld [vmem:[#allocation7 + $0x8] sm:$0xff] }
  0x12   :  { %v269_v12 = vld [vmem:[#allocation7] sm:$0xff] }
  0x13   :  { %109 = vmatpush.bf16.msra.mxu0 %v267_v1  ;;  %v284_v14 = vld [vmem:[%s439_s2] ss:$0 sm:$0xff] }
  0x14   :  { %188 = vmatpush.bf16.msra.mxu1 %v275_v5  ;;  %v285_v21 = vld [vmem:[%s441_s4] ss:$0 sm:$0xff] }
  0x15   :  { %v286_v24 = vld [vmem:[%s442_s5] ss:$0 sm:$0xff] }
  0x16   :  { %234 = vmatmul.msk.bf16.vlgmr.msra.gmra.mxu0 %vm98_vm0, %v77_v6 }
  0x18   :  { %189 = vmatpush.bf16.msra.mxu1 %v274_v7 }
  0x1c   :  { %190 = vmatpush.bf16.msra.mxu1 %v273_v8 }
  0x20   :  { %191 = vmatpush.bf16.msra.mxu1 %v272_v9 }
  0x24   :  { %192 = vmatpush.bf16.msra.mxu1 %v271_v10 }
  0x28   :  { %193 = vmatpush.bf16.msra.mxu1 %v270_v11 }
  0x2c   :  { %194 = vmatpush.bf16.msra.mxu1 %v269_v12 }
  0x93   :  { %v111_v13 = vpop.f32.mrf.mxu0 }
  0x94   :  { %v112_v15 = vadd.f32 %v284_v14, %v111_v13 }
  0x96   :  { %v116_v18 = vmax.f32 %v112_v15, 0.0 }
  0x9b   :  { %v113_v16 = vpop.f32.mrf.mxu0 }
  0x9c   :  { %v114_v17 = vadd.f32 %v284_v14, %v113_v16 }
  0x9e   :  { %v117_v19 = vmax.f32 %v114_v17, 0.0 }
  0xa0   :  { %v118_v20 = vpack.c.bf16 %v117_v19, %v116_v18 }
  0xa2   :  { %195 = vmatmul.bf16.vlgmr.msra.gmra.mxu1 %v118_v20 }
 0x11f   :  { %v196_v22 = vpop.f32.mrf.mxu1 }
 0x120   :  { %v197_v23 = vadd.f32 %v285_v21, %v196_v22 }
 0x122   :  { %v201_v25 = vmax.f32 %v197_v23, 0.0 }
 0x124   :  { %v207_v26 = vmul.f32 %v286_v24, %v201_v25 }
 0x126   :  { %209 = vadd.xlane.f32.xlu0 %v207_v26 }
 0x127   :  { %v198_v27 = vpop.f32.mrf.mxu1 }
 0x128   :  { %v199_v28 = vadd.f32 %v285_v21, %v198_v27 }
 0x12a   :  { %v202_v29 = vmax.f32 %v199_v28, 0.0 }
 0x12c   :  { %v208_v30 = vmul.f32 %v286_v24, %v202_v29 }
 0x12e   :  { %211 = vadd.xlane.f32.xlu0 %v208_v30 }
 0x199   :  { %v210_v32 = vpop.xlane.xlu0 %209 }
 0x19a   :  { %v215_v33 = vadd.f32 %v214_v31, %v210_v32 }
 0x19c   :  { %218 = vst.msk [vmem:[%s444_s7] sm:$0xff] %vm217_vm1, %v215_v33 }
 0x1a1   :  { %v212_v34 = vpop.xlane.xlu0 %211 }
 0x1a2   :  { %v216_v35 = vadd.f32 %v214_v31, %v212_v34 }
 0x1a4   :  { %219 = vst.msk [vmem:[%s444_s7 + $0x8] sm:$0xff] %vm217_vm1, %v216_v35 }
 0x1a5   :  { %224 = vsyncpa [#allocation4], 1 }
 0x1a6   :  { %225 = vsyncpa [#allocation6], 1 }

</bundles_post_ra>
